<compile_context>
chip_gen: v7x
topology: tpu7x:2x2x1
jax: 0.10.0
libtpu: 0.0.40
codegen_flags: <defaults>
</compile_context>

<pallas_src>
import functools

import jax
import jax.numpy as jnp
import numpy as np
from jax.experimental import pallas as pl
from jax.experimental.pallas import tpu as pltpu


# ---------------------------------------------------------------------------
# Fused kernel: one batch element per grid step, everything stays in VMEM.
# ---------------------------------------------------------------------------

def _fused_mixer_kernel(x_ref, w1t_ref, b1_ref, w2t_ref, b2_ref, w3t_ref, b3_ref,
                        w5_ref, b5_ref, w6_ref, b6_ref,
                        snp_ref, tnp_ref, sc_ref, tc_ref, o_ref, *, C, NP, PS):
    f32 = jnp.float32

    # ---- stage 1: intra_patch_mixer = Linear(PS,PS) + ReLU, then BN(num_patches)
    # x block (1, C*NP, PS): rows = (c, n), lanes = PS  -> plain 2-D matmul.
    x = x_ref[...].reshape(C * NP, PS)
    y = jnp.dot(x, w1t_ref[...], preferred_element_type=f32) + b1_ref[...]
    y = jnp.maximum(y, 0.0)
    # Folded BN over the num_patches axis: per-row scale/shift (row = c*NP + n).
    y = y * snp_ref[...] + tnp_ref[...]

    # ---- relayout in VMEM: rows = (c, p), lanes = NP  (torch swapaxes 1,2 / 1,3)
    y = jnp.transpose(y.reshape(C, NP, PS), (0, 2, 1)).reshape(C * PS, NP)

    # ---- stage 2: inter_patch_mixer = Linear(NP,H)+ReLU, Linear(H,NP), residual;
    #      then BN(channels) folded as per-row scale/shift (row = c*PS + p).
    h = jnp.maximum(
        jnp.dot(y, w2t_ref[...], preferred_element_type=f32) + b2_ref[...], 0.0)
    y = y + jnp.dot(h, w3t_ref[...], preferred_element_type=f32) + b3_ref[...]
    y = y * sc_ref[...] + tc_ref[...]

    # ---- relayout in VMEM: rows = C, lanes = (n, p)  == row-major (C, NP, PS)
    y = jnp.transpose(y.reshape(C, PS, NP), (0, 2, 1)).reshape(C, NP * PS)

    # ---- stage 3: channels_mixer = Linear(C,H)+ReLU, Linear(H,C), residual.
    # Done as LEFT matmuls so the result is already in the lane-dense output
    # layout (C, NP*PS): W5 (H,C) @ Y (C, NP*PS), W6 (C,H) @ H.
    h = jnp.maximum(
        jnp.dot(w5_ref[...], y, preferred_element_type=f32) + b5_ref[...], 0.0)
    y = y + jnp.dot(w6_ref[...], h, preferred_element_type=f32) + b6_ref[...]

    # Lane-dense store; wrapper reshapes (B, C, NP*PS) -> (B, C, NP, PS) for free.
    o_ref[...] = y.reshape(o_ref.shape).astype(o_ref.dtype)


def _const_spec(a):
    n = a.ndim
    return pl.BlockSpec(a.shape, lambda b, _n=n: (0,) * _n)


@jax.jit
def mixer_block_forward(x, p):
    """Default branch of MixerBlock.forward (excluded_component == 0), fused."""
    B, C, NP, PS = x.shape
    H = p['w2'].shape[0]

    # Kernel-layout operands (tiny; computed once per call, fused by XLA).
    w1t = p['w1'].T                    # (PS, PS)   Linear(PS,PS) weight^T
    b1 = p['b1'][None, :]              # (1, PS)
    w2t = p['w2'].T                    # (NP, H)    Linear(NP,H) weight^T
    b2 = p['b2'][None, :]              # (1, H)
    w3t = p['w3'].T                    # (H, NP)    Linear(H,NP) weight^T
    b3 = p['b3'][None, :]              # (1, NP)
    w5 = p['w5']                       # (H, C)     Linear(C,H) weight (left-multiply)
    b5 = p['b5'][:, None]              # (H, 1)
    w6 = p['w6']                       # (C, H)     Linear(H,C) weight (left-multiply)
    b6 = p['b6'][:, None]              # (C, 1)
    # Folded inference BatchNorm, expanded to per-row vectors of the in-kernel
    # 2-D layouts: stage-1 rows are (c, n) -> tile over C; stage-2 rows are
    # (c, p) -> repeat each channel PS times.
    snp = jnp.tile(p['s_np'], C)[:, None]     # (C*NP, 1)
    tnp = jnp.tile(p['t_np'], C)[:, None]     # (C*NP, 1)
    sc = jnp.repeat(p['s_c'], PS)[:, None]    # (C*PS, 1)
    tc = jnp.repeat(p['t_c'], PS)[:, None]    # (C*PS, 1)

    # Free row-major view of the input for the stage-1 matmul layout.
    x_rows = x.reshape(B, C * NP, PS)

    const_ops = (w1t, b1, w2t, b2, w3t, b3, w5, b5, w6, b6, snp, tnp, sc, tc)

    out = pl.pallas_call(
        functools.partial(_fused_mixer_kernel, C=C, NP=NP, PS=PS),
        out_shape=jax.ShapeDtypeStruct((B, C, NP * PS), x.dtype),
        grid=(B,),
        in_specs=[pl.BlockSpec((1, C * NP, PS), lambda b: (b, 0, 0))]
                 + [_const_spec(a) for a in const_ops],
        out_specs=pl.BlockSpec((1, C, NP * PS), lambda b: (b, 0, 0)),
        compiler_params=pltpu.CompilerParams(dimension_semantics=("parallel",)),
    )(x_rows, *const_ops)

    return out.reshape(B, C, NP, PS)   # free reshape back to the torch layout


# ---------------------------------------------------------------------------
# Deterministic parameter init (shapes follow the PyTorch __init__)
# ---------------------------------------------------------------------------

def init_params(key, C, NP, PS, H):
    ks = jax.random.split(key, 18)
    f32 = jnp.float32
    w = lambda k, shp: (0.1 * jax.random.normal(k, shp)).astype(f32)
    eps = 1e-5  # BatchNorm2d default

    w1, b1 = w(ks[0], (PS, PS)), w(ks[1], (PS,))      # intra_patch_mixer
    w2, b2 = w(ks[2], (H, NP)), w(ks[3], (H,))        # inter_patch_mixer in
    w3, b3 = w(ks[4], (NP, H)), w(ks[5], (NP,))       # inter_patch_mixer out
    w5, b5 = w(ks[6], (H, C)), w(ks[7], (H,))         # channels_mixer in
    w6, b6 = w(ks[8], (C, H)), w(ks[9], (C,))         # channels_mixer out

    # BatchNorm2d(num_patches) / BatchNorm2d(channels), inference running stats.
    g_np = (1.0 + 0.1 * jax.random.normal(ks[10], (NP,))).astype(f32)
    be_np = w(ks[11], (NP,))
    m_np = w(ks[12], (NP,))
    v_np = (jnp.abs(jax.random.normal(ks[13], (NP,))) * 0.5 + 0.5).astype(f32)
    g_c = (1.0 + 0.1 * jax.random.normal(ks[14], (C,))).astype(f32)
    be_c = w(ks[15], (C,))
    m_c = w(ks[16], (C,))
    v_c = (jnp.abs(jax.random.normal(ks[17], (C,))) * 0.5 + 0.5).astype(f32)

    s_np = g_np / jnp.sqrt(v_np + eps)
    t_np = be_np - m_np * s_np
    s_c = g_c / jnp.sqrt(v_c + eps)
    t_c = be_c - m_c * s_c

    return dict(w1=w1, b1=b1, w2=w2, b2=b2, w3=w3, b3=b3,
                w5=w5, b5=b5, w6=w6, b6=b6,
                s_np=s_np, t_np=t_np, s_c=s_c, t_c=t_c)


# ---------------------------------------------------------------------------
# Pure-JAX reference (mirrors the PyTorch forward, inference mode)
# ---------------------------------------------------------------------------

def ref_forward(x, p):
    relu = lambda v: jnp.maximum(v, 0.0)
    with jax.default_matmul_precision("highest"):
        y = relu(x @ p['w1'].T + p['b1'])                               # (B,C,NP,PS)
        y = jnp.swapaxes(y, 1, 2)                                       # (B,NP,C,PS)
        y = y * p['s_np'][None, :, None, None] + p['t_np'][None, :, None, None]
        y = jnp.swapaxes(y, 1, 3)                                       # (B,PS,C,NP)
        h = relu(y @ p['w2'].T + p['b2'])
        y = y + h @ p['w3'].T + p['b3']
        y = jnp.swapaxes(y, 1, 2)                                       # (B,C,PS,NP)
        y = y * p['s_c'][None, :, None, None] + p['t_c'][None, :, None, None]
        y = jnp.swapaxes(y, 1, 3)                                       # (B,NP,PS,C)
        h = relu(y @ p['w5'].T + p['b5'])
        y = y + h @ p['w6'].T + p['b6']
        y = jnp.swapaxes(y, 2, 3)
        y = jnp.swapaxes(y, 1, 2)                                       # (B,C,NP,PS)
    return y


if __name__ == "__main__":
    B, C, NP, PS, H = 2, 8, 8, 16, 32   # NP*PS = 128 -> lane-dense output blocks

    key = jax.random.PRNGKey(0)
    kx, kp = jax.random.split(key)
    x = jax.random.normal(kx, (B, C, NP, PS), dtype=jnp.float32)
    params = init_params(kp, C, NP, PS, H)

    out = mixer_block_forward(x, params)
    out = jax.block_until_ready(out)

    ref = ref_forward(x, params)
    assert out.shape == (B, C, NP, PS)
    np.testing.assert_allclose(np.asarray(out), np.asarray(ref),
                               rtol=1e-3, atol=1e-3)

    print("KERNEL_OK")
</pallas_src>

<mosaic_0001>
module attributes {stable_mosaic.version = 11 : i64} {
  func.func @_fused_mixer_kernel(%arg0: i32, %arg1: memref<1x64x16xf32, #tpu.memory_space<vmem>>, %arg2: memref<16x16xf32, #tpu.memory_space<vmem>>, %arg3: memref<1x16xf32, #tpu.memory_space<vmem>>, %arg4: memref<8x32xf32, #tpu.memory_space<vmem>>, %arg5: memref<1x32xf32, #tpu.memory_space<vmem>>, %arg6: memref<32x8xf32, #tpu.memory_space<vmem>>, %arg7: memref<1x8xf32, #tpu.memory_space<vmem>>, %arg8: memref<32x8xf32, #tpu.memory_space<vmem>>, %arg9: memref<32x1xf32, #tpu.memory_space<vmem>>, %arg10: memref<8x32xf32, #tpu.memory_space<vmem>>, %arg11: memref<8x1xf32, #tpu.memory_space<vmem>>, %arg12: memref<64x1xf32, #tpu.memory_space<vmem>>, %arg13: memref<64x1xf32, #tpu.memory_space<vmem>>, %arg14: memref<128x1xf32, #tpu.memory_space<vmem>>, %arg15: memref<128x1xf32, #tpu.memory_space<vmem>>, %arg16: memref<1x8x128xf32, #tpu.memory_space<vmem>>) attributes {dimension_semantics = [#tpu.dimension_semantics<parallel>], iteration_bounds = array<i64: 2>, scalar_prefetch = 0 : i64, scratch_operands = 0 : i64, tpu.core_type = #tpu.core_type<tc>, window_params = [{transform_indices = @transform_0, window_bounds = array<i64: 1, 64, 16>}, {pipeline_mode = #tpu.pipeline_mode<synchronous>, transform_indices = @transform_1, window_bounds = array<i64: 16, 16>}, {pipeline_mode = #tpu.pipeline_mode<synchronous>, transform_indices = @transform_2, window_bounds = array<i64: 1, 16>}, {pipeline_mode = #tpu.pipeline_mode<synchronous>, transform_indices = @transform_3, window_bounds = array<i64: 8, 32>}, {pipeline_mode = #tpu.pipeline_mode<synchronous>, transform_indices = @transform_4, window_bounds = array<i64: 1, 32>}, {pipeline_mode = #tpu.pipeline_mode<synchronous>, transform_indices = @transform_5, window_bounds = array<i64: 32, 8>}, {pipeline_mode = #tpu.pipeline_mode<synchronous>, transform_indices = @transform_6, window_bounds = array<i64: 1, 8>}, {pipeline_mode = #tpu.pipeline_mode<synchronous>, transform_indices = @transform_7, window_bounds = array<i64: 32, 8>}, {pipeline_mode = #tpu.pipeline_mode<synchronous>, transform_indices = @transform_8, window_bounds = array<i64: 32, 1>}, {pipeline_mode = #tpu.pipeline_mode<synchronous>, transform_indices = @transform_9, window_bounds = array<i64: 8, 32>}, {pipeline_mode = #tpu.pipeline_mode<synchronous>, transform_indices = @transform_10, window_bounds = array<i64: 8, 1>}, {pipeline_mode = #tpu.pipeline_mode<synchronous>, transform_indices = @transform_11, window_bounds = array<i64: 64, 1>}, {pipeline_mode = #tpu.pipeline_mode<synchronous>, transform_indices = @transform_12, window_bounds = array<i64: 64, 1>}, {pipeline_mode = #tpu.pipeline_mode<synchronous>, transform_indices = @transform_13, window_bounds = array<i64: 128, 1>}, {pipeline_mode = #tpu.pipeline_mode<synchronous>, transform_indices = @transform_14, window_bounds = array<i64: 128, 1>}, {transform_indices = @transform_15, window_bounds = array<i64: 1, 8, 128>}]} {
    %c0 = arith.constant 0 : index
    %c0_0 = arith.constant 0 : index
    %c0_1 = arith.constant 0 : index
    %0 = vector.load %arg1[%c0, %c0_0, %c0_1] : memref<1x64x16xf32, #tpu.memory_space<vmem>>, vector<1x64x16xf32>
    %1 = vector.shape_cast %0 : vector<1x64x16xf32> to vector<64x16xf32>
    %c0_2 = arith.constant 0 : index
    %c0_3 = arith.constant 0 : index
    %2 = vector.load %arg2[%c0_2, %c0_3] : memref<16x16xf32, #tpu.memory_space<vmem>>, vector<16x16xf32>
    %cst = arith.constant dense<0.000000e+00> : vector<64x16xf32>
    %3 = tpu.matmul %1, %2, %cst {dimension_numbers = #tpu.dot_dimension_numbers<[1], [0], [0], [1], [0, 0, 1, 1], [], []>} : vector<64x16xf32>, vector<16x16xf32>, vector<64x16xf32> -> vector<64x16xf32>
    %c0_4 = arith.constant 0 : index
    %c0_5 = arith.constant 0 : index
    %4 = vector.load %arg3[%c0_4, %c0_5] : memref<1x16xf32, #tpu.memory_space<vmem>>, vector<1x16xf32>
    %5 = vector.broadcast %4 : vector<1x16xf32> to vector<64x16xf32>
    %6 = arith.addf %3, %5 : vector<64x16xf32>
    %cst_6 = arith.constant 0.000000e+00 : f32
    %7 = vector.broadcast %cst_6 : f32 to vector<64x16xf32>
    %8 = arith.maximumf %6, %7 : vector<64x16xf32>
    %c0_7 = arith.constant 0 : index
    %c0_8 = arith.constant 0 : index
    %9 = vector.load %arg12[%c0_7, %c0_8] : memref<64x1xf32, #tpu.memory_space<vmem>>, vector<64x1xf32>
    %10 = vector.broadcast %9 : vector<64x1xf32> to vector<64x16xf32>
    %11 = arith.mulf %8, %10 : vector<64x16xf32>
    %c0_9 = arith.constant 0 : index
    %c0_10 = arith.constant 0 : index
    %12 = vector.load %arg13[%c0_9, %c0_10] : memref<64x1xf32, #tpu.memory_space<vmem>>, vector<64x1xf32>
    %13 = vector.broadcast %12 : vector<64x1xf32> to vector<64x16xf32>
    %14 = arith.addf %11, %13 : vector<64x16xf32>
    %15 = vector.shape_cast %14 : vector<64x16xf32> to vector<8x8x16xf32>
    %16 = tpu.transpose %15, [0, 2, 1] : vector<8x8x16xf32> -> vector<8x16x8xf32>
    %17 = vector.shape_cast %16 : vector<8x16x8xf32> to vector<128x8xf32>
    %c0_11 = arith.constant 0 : index
    %c0_12 = arith.constant 0 : index
    %18 = vector.load %arg4[%c0_11, %c0_12] : memref<8x32xf32, #tpu.memory_space<vmem>>, vector<8x32xf32>
    %cst_13 = arith.constant dense<0.000000e+00> : vector<128x32xf32>
    %19 = tpu.matmul %17, %18, %cst_13 {dimension_numbers = #tpu.dot_dimension_numbers<[1], [0], [0], [1], [0, 0, 1, 1], [], []>} : vector<128x8xf32>, vector<8x32xf32>, vector<128x32xf32> -> vector<128x32xf32>
    %c0_14 = arith.constant 0 : index
    %c0_15 = arith.constant 0 : index
    %20 = vector.load %arg5[%c0_14, %c0_15] : memref<1x32xf32, #tpu.memory_space<vmem>>, vector<1x32xf32>
    %21 = vector.broadcast %20 : vector<1x32xf32> to vector<128x32xf32>
    %22 = arith.addf %19, %21 : vector<128x32xf32>
    %cst_16 = arith.constant 0.000000e+00 : f32
    %23 = vector.broadcast %cst_16 : f32 to vector<128x32xf32>
    %24 = arith.maximumf %22, %23 : vector<128x32xf32>
    %c0_17 = arith.constant 0 : index
    %c0_18 = arith.constant 0 : index
    %25 = vector.load %arg6[%c0_17, %c0_18] : memref<32x8xf32, #tpu.memory_space<vmem>>, vector<32x8xf32>
    %cst_19 = arith.constant dense<0.000000e+00> : vector<128x8xf32>
    %26 = tpu.matmul %24, %25, %cst_19 {dimension_numbers = #tpu.dot_dimension_numbers<[1], [0], [0], [1], [0, 0, 1, 1], [], []>} : vector<128x32xf32>, vector<32x8xf32>, vector<128x8xf32> -> vector<128x8xf32>
    %27 = arith.addf %17, %26 : vector<128x8xf32>
    %c0_20 = arith.constant 0 : index
    %c0_21 = arith.constant 0 : index
    %28 = vector.load %arg7[%c0_20, %c0_21] : memref<1x8xf32, #tpu.memory_space<vmem>>, vector<1x8xf32>
    %29 = vector.broadcast %28 : vector<1x8xf32> to vector<128x8xf32>
    %30 = arith.addf %27, %29 : vector<128x8xf32>
    %c0_22 = arith.constant 0 : index
    %c0_23 = arith.constant 0 : index
    %31 = vector.load %arg14[%c0_22, %c0_23] : memref<128x1xf32, #tpu.memory_space<vmem>>, vector<128x1xf32>
    %32 = vector.broadcast %31 : vector<128x1xf32> to vector<128x8xf32>
    %33 = arith.mulf %30, %32 : vector<128x8xf32>
    %c0_24 = arith.constant 0 : index
    %c0_25 = arith.constant 0 : index
    %34 = vector.load %arg15[%c0_24, %c0_25] : memref<128x1xf32, #tpu.memory_space<vmem>>, vector<128x1xf32>
    %35 = vector.broadcast %34 : vector<128x1xf32> to vector<128x8xf32>
    %36 = arith.addf %33, %35 : vector<128x8xf32>
    %37 = vector.shape_cast %36 : vector<128x8xf32> to vector<8x16x8xf32>
    %38 = tpu.transpose %37, [0, 2, 1] : vector<8x16x8xf32> -> vector<8x8x16xf32>
    %39 = vector.shape_cast %38 : vector<8x8x16xf32> to vector<8x128xf32>
    %c0_26 = arith.constant 0 : index
    %c0_27 = arith.constant 0 : index
    %40 = vector.load %arg8[%c0_26, %c0_27] : memref<32x8xf32, #tpu.memory_space<vmem>>, vector<32x8xf32>
    %cst_28 = arith.constant dense<0.000000e+00> : vector<32x128xf32>
    %41 = tpu.matmul %40, %39, %cst_28 {dimension_numbers = #tpu.dot_dimension_numbers<[1], [0], [0], [1], [0, 0, 1, 1], [], []>} : vector<32x8xf32>, vector<8x128xf32>, vector<32x128xf32> -> vector<32x128xf32>
    %c0_29 = arith.constant 0 : index
    %c0_30 = arith.constant 0 : index
    %42 = vector.load %arg9[%c0_29, %c0_30] : memref<32x1xf32, #tpu.memory_space<vmem>>, vector<32x1xf32>
    %43 = vector.broadcast %42 : vector<32x1xf32> to vector<32x128xf32>
    %44 = arith.addf %41, %43 : vector<32x128xf32>
    %cst_31 = arith.constant 0.000000e+00 : f32
    %45 = vector.broadcast %cst_31 : f32 to vector<32x128xf32>
    %46 = arith.maximumf %44, %45 : vector<32x128xf32>
    %c0_32 = arith.constant 0 : index
    %c0_33 = arith.constant 0 : index
    %47 = vector.load %arg10[%c0_32, %c0_33] : memref<8x32xf32, #tpu.memory_space<vmem>>, vector<8x32xf32>
    %cst_34 = arith.constant dense<0.000000e+00> : vector<8x128xf32>
    %48 = tpu.matmul %47, %46, %cst_34 {dimension_numbers = #tpu.dot_dimension_numbers<[1], [0], [0], [1], [0, 0, 1, 1], [], []>} : vector<8x32xf32>, vector<32x128xf32>, vector<8x128xf32> -> vector<8x128xf32>
    %49 = arith.addf %39, %48 : vector<8x128xf32>
    %c0_35 = arith.constant 0 : index
    %c0_36 = arith.constant 0 : index
    %50 = vector.load %arg11[%c0_35, %c0_36] : memref<8x1xf32, #tpu.memory_space<vmem>>, vector<8x1xf32>
    %51 = vector.broadcast %50 : vector<8x1xf32> to vector<8x128xf32>
    %52 = arith.addf %49, %51 : vector<8x128xf32>
    %53 = vector.shape_cast %52 : vector<8x128xf32> to vector<1x8x128xf32>
    %c0_37 = arith.constant 0 : index
    %c0_38 = arith.constant 0 : index
    %c0_39 = arith.constant 0 : index
    %54 = vector.load %arg16[%c0_37, %c0_38, %c0_39] : memref<1x8x128xf32, #tpu.memory_space<vmem>>, vector<1x8x128xf32>
    tpu.vector_store %arg16[%c0_37, %c0_38, %c0_39], %53 {strides = array<i32>} : memref<1x8x128xf32, #tpu.memory_space<vmem>>, vector<1x8x128xf32>,
    return
  }
  func.func @transform_0(%arg0: i32) -> (i32, i32, i32) {
    %c0_i32 = arith.constant 0 : i32
    %c0_i32_0 = arith.constant 0 : i32
    %c0_i32_1 = arith.constant 0 : i32
    return %arg0, %c0_i32, %c0_i32_0 : i32, i32, i32
  }
  func.func @transform_1(%arg0: i32) -> (i32, i32) {
    %c0_i32 = arith.constant 0 : i32
    %c0_i32_0 = arith.constant 0 : i32
    %c0_i32_1 = arith.constant 0 : i32
    return %c0_i32, %c0_i32_0 : i32, i32
  }
  func.func @transform_2(%arg0: i32) -> (i32, i32) {
    %c0_i32 = arith.constant 0 : i32
    %c0_i32_0 = arith.constant 0 : i32
    %c0_i32_1 = arith.constant 0 : i32
    return %c0_i32, %c0_i32_0 : i32, i32
  }
  func.func @transform_3(%arg0: i32) -> (i32, i32) {
    %c0_i32 = arith.constant 0 : i32
    %c0_i32_0 = arith.constant 0 : i32
    %c0_i32_1 = arith.constant 0 : i32
    return %c0_i32, %c0_i32_0 : i32, i32
  }
  func.func @transform_4(%arg0: i32) -> (i32, i32) {
    %c0_i32 = arith.constant 0 : i32
    %c0_i32_0 = arith.constant 0 : i32
    %c0_i32_1 = arith.constant 0 : i32
    return %c0_i32, %c0_i32_0 : i32, i32
  }
  func.func @transform_5(%arg0: i32) -> (i32, i32) {
    %c0_i32 = arith.constant 0 : i32
    %c0_i32_0 = arith.constant 0 : i32
    %c0_i32_1 = arith.constant 0 : i32
    return %c0_i32, %c0_i32_0 : i32, i32
  }
  func.func @transform_6(%arg0: i32) -> (i32, i32) {
    %c0_i32 = arith.constant 0 : i32
    %c0_i32_0 = arith.constant 0 : i32
    %c0_i32_1 = arith.constant 0 : i32
    return %c0_i32, %c0_i32_0 : i32, i32
  }
  func.func @transform_7(%arg0: i32) -> (i32, i32) {
    %c0_i32 = arith.constant 0 : i32
    %c0_i32_0 = arith.constant 0 : i32
    %c0_i32_1 = arith.constant 0 : i32
    return %c0_i32, %c0_i32_0 : i32, i32
  }
  func.func @transform_8(%arg0: i32) -> (i32, i32) {
    %c0_i32 = arith.constant 0 : i32
    %c0_i32_0 = arith.constant 0 : i32
    %c0_i32_1 = arith.constant 0 : i32
    return %c0_i32, %c0_i32_0 : i32, i32
  }
  func.func @transform_9(%arg0: i32) -> (i32, i32) {
    %c0_i32 = arith.constant 0 : i32
    %c0_i32_0 = arith.constant 0 : i32
    %c0_i32_1 = arith.constant 0 : i32
    return %c0_i32, %c0_i32_0 : i32, i32
  }
  func.func @transform_10(%arg0: i32) -> (i32, i32) {
    %c0_i32 = arith.constant 0 : i32
    %c0_i32_0 = arith.constant 0 : i32
    %c0_i32_1 = arith.constant 0 : i32
    return %c0_i32, %c0_i32_0 : i32, i32
  }
  func.func @transform_11(%arg0: i32) -> (i32, i32) {
    %c0_i32 = arith.constant 0 : i32
    %c0_i32_0 = arith.constant 0 : i32
    %c0_i32_1 = arith.constant 0 : i32
    return %c0_i32, %c0_i32_0 : i32, i32
  }
  func.func @transform_12(%arg0: i32) -> (i32, i32) {
    %c0_i32 = arith.constant 0 : i32
    %c0_i32_0 = arith.constant 0 : i32
    %c0_i32_1 = arith.constant 0 : i32
    return %c0_i32, %c0_i32_0 : i32, i32
  }
  func.func @transform_13(%arg0: i32) -> (i32, i32) {
    %c0_i32 = arith.constant 0 : i32
    %c0_i32_0 = arith.constant 0 : i32
    %c0_i32_1 = arith.constant 0 : i32
    return %c0_i32, %c0_i32_0 : i32, i32
  }
  func.func @transform_14(%arg0: i32) -> (i32, i32) {
    %c0_i32 = arith.constant 0 : i32
    %c0_i32_0 = arith.constant 0 : i32
    %c0_i32_1 = arith.constant 0 : i32
    return %c0_i32, %c0_i32_0 : i32, i32
  }
  func.func @transform_15(%arg0: i32) -> (i32, i32, i32) {
    %c0_i32 = arith.constant 0 : i32
    %c0_i32_0 = arith.constant 0 : i32
    %c0_i32_1 = arith.constant 0 : i32
    return %arg0, %c0_i32, %c0_i32_0 : i32, i32, i32
  }
}

</mosaic_0001>

<bundles_post_ra>
// kernel: tile.13
= control target key start
LH: loop header
LB: loop body
LE: loop exit
PB: predicated region body
PF: predicated region fallthrough
CT: control target
= control target key end

     0   :  { %s22_s0 = inlined_call_operand.vmem [shape: f32[8], index: 0, kind: input, shape index: {}]   ;;  %s23_s1 = inlined_call_operand.vmem [shape: f32[8,8], index: 1, kind: output, shape index: {}]  }
   0x1   :  { %v4_v0 = vld [vmem:[%s22_s0] ss:$0 sm:$0xff] }
   0x2   :  { %5 = vst [vmem:[%s23_s1] sm:$0xff] %v4_v0 }

// kernel: tile.1
= control target key start
LH: loop header
LB: loop body
LE: loop exit
PB: predicated region body
PF: predicated region fallthrough
CT: control target
= control target key end

     0   :  { %vm3_vm0 = vcmask 7168   ;;  %s84_s8 = smov 125   ;;  %s85_s13 = smov 126   ;;  %s167_s0 = inlined_call_operand.vmem [shape: f32[8,8], index: 0, kind: input, shape index: {}]   ;;  %s168_s1 = inlined_call_operand.vmem [shape: f32[64,1], index: 1, kind: output, shape index: {}]  }
   0x1   :  { %v6_v0 = vld [vmem:[%s167_s0] sm:$0xff]   ;;  %s83_s0 = smov 127   ;;  %s86_s14 = smov 124  }
   0x2   :  { %7 = vrot.lane.b32.xlu0 %v6_v0, %s83_s0  ;;  %23 = vrot.lane.b32.xlu1 %v6_v0, %s84_s8  ;;  %4 = vst.msk [vmem:[%s168_s1] ss:$8 sm:$0xf] %vm3_vm0, %v6_v0   ;;  %5 = vst.msk [vmem:[%s168_s1] ss:$8 sm:$0xf0] %vm3_vm0, %v6_v0  }
   0x3   :  { %s87_s15 = smov 123   ;;  %s88_s16 = smov 122  }
   0x4   :  { %s89_s17 = smov 121  }
   0x6   :  { %15 = vrot.lane.b32.xlu0 %v6_v0, %s85_s13  ;;  %31 = vrot.lane.b32.xlu1 %v6_v0, %s86_s14 }
   0xa   :  { %39 = vrot.lane.b32.xlu0 %v6_v0, %s87_s15  ;;  %47 = vrot.lane.b32.xlu1 %v6_v0, %s88_s16 }
   0xe   :  { %55 = vrot.lane.b32.xlu0 %v6_v0, %s89_s17 }
  0x74   :  { %v8_v1 = vpop.permute.xlu0 %7   ;;  %v24_v2 = vpop.permute.xlu1 %23  }
  0x75   :  { %62 = vst.msk [vmem:[%s168_s1 + $0x1] ss:$8 sm:$0xf] %vm3_vm0, %v8_v1   ;;  %63 = vst.msk [vmem:[%s168_s1 + $0x1] ss:$8 sm:$0xf0] %vm3_vm0, %v8_v1  }
  0x76   :  { %66 = vst.msk [vmem:[%s168_s1 + $0x3] ss:$8 sm:$0xf] %vm3_vm0, %v24_v2   ;;  %67 = vst.msk [vmem:[%s168_s1 + $0x3] ss:$8 sm:$0xf0] %vm3_vm0, %v24_v2  }
  0x78   :  { %v16_v3 = vpop.permute.xlu0 %15   ;;  %v32_v4 = vpop.permute.xlu1 %31  }
  0x79   :  { %64 = vst.msk [vmem:[%s168_s1 + $0x2] ss:$8 sm:$0xf] %vm3_vm0, %v16_v3   ;;  %65 = vst.msk [vmem:[%s168_s1 + $0x2] ss:$8 sm:$0xf0] %vm3_vm0, %v16_v3  }
  0x7a   :  { %68 = vst.msk [vmem:[%s168_s1 + $0x4] ss:$8 sm:$0xf] %vm3_vm0, %v32_v4   ;;  %69 = vst.msk [vmem:[%s168_s1 + $0x4] ss:$8 sm:$0xf0] %vm3_vm0, %v32_v4  }
  0x7c   :  { %v40_v5 = vpop.permute.xlu0 %39   ;;  %v48_v6 = vpop.permute.xlu1 %47  }
  0x7d   :  { %70 = vst.msk [vmem:[%s168_s1 + $0x5] ss:$8 sm:$0xf] %vm3_vm0, %v40_v5   ;;  %71 = vst.msk [vmem:[%s168_s1 + $0x5] ss:$8 sm:$0xf0] %vm3_vm0, %v40_v5  }
  0x7e   :  { %72 = vst.msk [vmem:[%s168_s1 + $0x6] ss:$8 sm:$0xf] %vm3_vm0, %v48_v6   ;;  %73 = vst.msk [vmem:[%s168_s1 + $0x6] ss:$8 sm:$0xf0] %vm3_vm0, %v48_v6  }
  0x80   :  { %v56_v7 = vpop.permute.xlu0 %55  }
  0x81   :  { %74 = vst.msk [vmem:[%s168_s1 + $0x7] ss:$8 sm:$0xf] %vm3_vm0, %v56_v7   ;;  %75 = vst.msk [vmem:[%s168_s1 + $0x7] ss:$8 sm:$0xf0] %vm3_vm0, %v56_v7  }

// kernel: mixer_block_forward.1
= control target key start
LH: loop header
LB: loop body
LE: loop exit
PB: predicated region body
PF: predicated region fallthrough
CT: control target
= control target key end

     0   :  { %s2743_s18 = smov 0   ;;  %s3139_s0 = inlined_call_operand.vmem [shape: f32[2,64,16], index: 0, kind: input, shape index: {}]   ;;  %s3140_s1 = inlined_call_operand.vmem [shape: f32[16,16], index: 1, kind: input, shape index: {}]   ;;  %s3141_s2 = inlined_call_operand.vmem [shape: f32[1,16], index: 2, kind: input, shape index: {}]   ;;  %s3142_s3 = inlined_call_operand.vmem [shape: f32[8,32], index: 3, kind: input, shape index: {}]   ;;  %s3143_s4 = inlined_call_operand.vmem [shape: f32[1,32], index: 4, kind: input, shape index: {}]   ;;  %s3144_s5 = inlined_call_operand.vmem [shape: f32[32,8], index: 5, kind: input, shape index: {}]   ;;  %s3145_s6 = inlined_call_operand.vmem [shape: f32[1,8], index: 6, kind: input, shape index: {}]   ;;  %s3146_s7 = inlined_call_operand.vmem [shape: f32[32,8], index: 7, kind: input, shape index: {}]   ;;  %s3147_s8 = inlined_call_operand.vmem [shape: f32[32,1], index: 8, kind: input, shape index: {}]   ;;  %s3148_s9 = inlined_call_operand.vmem [shape: f32[8,32], index: 9, kind: input, shape index: {}]   ;;  %s3149_s10 = inlined_call_operand.vmem [shape: f32[8,1], index: 10, kind: input, shape index: {}]   ;;  %s3150_s11 = inlined_call_operand.vmem [shape: f32[64,1], index: 11, kind: input, shape index: {}]   ;;  %s3151_s12 = inlined_call_operand.vmem [shape: f32[64,1], index: 12, kind: input, shape index: {}]   ;;  %s3152_s13 = inlined_call_operand.vmem [shape: f32[128,1], index: 13, kind: input, shape index: {}]   ;;  %s3153_s14 = inlined_call_operand.vmem [shape: f32[128,1], index: 14, kind: input, shape index: {}]   ;;  %s3154_s15 = inlined_call_operand.vmem [shape: f32[2,8,128], index: 15, kind: output, shape index: {}]  }
   0x1 LB: > { %s2392_s19 = sadd.s32 4294967295, %s2648_s18   ;;  %p2396_p0 = scmp.ge.s32.totalorder %s2648_s18, 1  ;;  %s2648_s18 = sphi %s2743_s18, %s25_s18  }
   0x2   : > { %p437_p1 = scmp.lt.s32.totalorder %s2648_s18, 3 }
   0x4   : > { %p438_p2 = pnand %p2396_p0, %p437_p1 }
   0x5   : > { %v501_v0 = vld [vmem:[%s3140_s1] sm:$0xff] (!%p438_p2)  ;;  %v502_v1 = vld [vmem:[%s3140_s1 + $0x8] sm:$0xff] (!%p438_p2)  ;;  %p484_p3 = scmp.lt.s32.totalorder (!%p438_p2), %s2392_s19, 1  ;;  %v2650_v4 = vmov (!%p438_p2), 0   ;;  %vm510_vm0 = vcmask (!%p438_p2), 130048   ;;  %v650_v11 = vld [vmem:[%s3150_s11 + $0x10] sm:$0xff] (!%p438_p2) }
   0x6   : > { %441 = sbr.rel (%p438_p2) target bundleno = 1567 (0x61f), region = 80  ;;  %v648_v2 = vld [vmem:[%s3150_s11] sm:$0xff] (!%p438_p2)  ;;  %v2601_v3 = vpack.c.bf16 (!%p438_p2), %v502_v1, %v501_v0  ;;  %2640 = vset.pattern.permute.xlu0 (!%p438_p2), %v2650_v4  ;;  %2641 = vset.pattern.permute.xlu1 (!%p438_p2), %v2650_v4  ;;  %v649_v5 = vld [vmem:[%s3150_s11 + $0x8] sm:$0xff] (!%p438_p2)  ;;  %v706_v12 = vld [vmem:[%s3151_s12 + $0x10] sm:$0xff] (!%p438_p2)  ;;  %vm1024_vm1 = vcmask (!%p438_p2), 64512   ;;  %vm1238_vm2 = vcmask (!%p438_p2), 261120  }
   0x7   : > { %658 = vperm.xlu0 (!%p438_p2), %2640, %v648_v2   ;;  %663 = vperm.xlu1 (!%p438_p2), %2641, %v649_v5   ;;  %v704_v6 = vld [vmem:[%s3151_s12] sm:$0xff] (!%p438_p2)  ;;  %v705_v7 = vld [vmem:[%s3151_s12 + $0x8] sm:$0xff] (!%p438_p2)  ;;  %v651_v15 = vld [vmem:[%s3150_s11 + $0x18] sm:$0xff] (!%p438_p2)  ;;  %s2653_s24 = smov (!%p438_p2), 32   ;;  %s2654_s25 = smov (!%p438_p2), 16   ;;  %vm2117_vm3 = vcmask (!%p438_p2), 392192  }
   0x8   : > { %2602 = vmatprep.subr.bf16.mxu0 (!%p438_p2), %v2601_v3  ;;  %v707_v16 = vld [vmem:[%s3151_s12 + $0x18] sm:$0xff] (!%p438_p2)  ;;  %v652_v19 = vld [vmem:[%s3150_s11 + $0x20] sm:$0xff] (!%p438_p2)  ;;  %v653_v22 = vld [vmem:[%s3150_s11 + $0x28] sm:$0xff] (!%p438_p2)  ;;  %s2655_s28 = smov (!%p438_p2), 48   ;;  %s2656_s30 = smov (!%p438_p2), 64   ;;  %vm2119_vm4 = vcmask (!%p438_p2), 523264  }
   0x9   : > { %2604 = vmatpush3.bf16.msra.mxu0 (!%p438_p2), %v2601_v3  ;;  %v708_v20 = vld [vmem:[%s3151_s12 + $0x20] sm:$0xff] (!%p438_p2)  ;;  %v709_v23 = vld [vmem:[%s3151_s12 + $0x28] sm:$0xff] (!%p438_p2)  ;;  %v654_v24 = vld [vmem:[%s3150_s11 + $0x30] sm:$0xff] (!%p438_p2)  ;;  %s2657_s23 = smov (!%p438_p2), 80   ;;  %vm2121_vm5 = vcmask (!%p438_p2), 654336   ;;  %vm2123_vm6 = vcmask (!%p438_p2), 785408  }
   0xa   : > { %v710_v25 = vld [vmem:[%s3151_s12 + $0x30] sm:$0xff] (!%p438_p2)  ;;  %v655_v26 = vld [vmem:[%s3150_s11 + $0x38] sm:$0xff] (!%p438_p2)  ;;  %v2400_v37 = vld [vmem:[%s3141_s2] ss:$0 sm:$0xff] (!%p438_p2)  ;;  %vm2125_vm7 = vcmask (!%p438_p2), 916480   ;;  %vm2661_vm8 = vmmov (!%p438_p2), 0  }
   0xb   : > { %714 = vperm.xlu0 (!%p438_p2), %2640, %v704_v6   ;;  %719 = vperm.xlu1 (!%p438_p2), %2641, %v705_v7   ;;  %v711_v27 = vld [vmem:[%s3151_s12 + $0x38] sm:$0xff] (!%p438_p2)  ;;  %v1016_v0 = vld [vmem:[%s3142_s3] sm:$0xff] (!%p438_p2) }
   0xc   : > { %2524 = vmatprep.subr.mxu1 (!%p438_p2), %v1016_v0 }
   0xd   : > { %s3156_s19 = smov (!%p484_p3, %s2392_s19), 1  ;;  %2525 = vmatpush3.msra.mxu1 %v1016_v0 }
   0xe   : > { %s2450_s17 = sshll.u32 %s3156_s19, 6 }
   0xf   : > { %s488_s22 = scalar_lea.vmem %s3139_s0, %s2450_s17  ;;  %668 = vperm.xlu0 %2640, %v650_v11   ;;  %724 = vperm.xlu1 %2641, %v706_v12  }
  0x10   : > { %v493_v8 = vld [vmem:[%s488_s22] sm:$0xff]  ;;  %v494_v9 = vld [vmem:[%s488_s22 + $0x8] sm:$0xff]  ;;  %v495_v10 = vld [vmem:[%s488_s22 + $0x10] sm:$0xff] }
  0x11   : > { %2512 = vmatprep.mubr.msk.f32.mxu0 %vm510_vm0, %v493_v8  ;;  %v496_v13 = vld [vmem:[%s488_s22 + $0x18] sm:$0xff]  ;;  %v497_v14 = vld [vmem:[%s488_s22 + $0x20] sm:$0xff]  ;;  %v498_v17 = vld [vmem:[%s488_s22 + $0x28] sm:$0xff] }
  0x12   : > { %2513 = vmatmul.mubr.msk.f32.vlgmr.msra.gmra.mrb[0].mxu0 %vm510_vm0, %v494_v9  ;;  %v499_v18 = vld [vmem:[%s488_s22 + $0x30] sm:$0xff]  ;;  %v500_v21 = vld [vmem:[%s488_s22 + $0x38] sm:$0xff] }
  0x13   : > { %2515 = vmatprep.mubr.msk.f32.mxu0 %vm510_vm0, %v495_v10  ;;  %673 = vperm.xlu0 %2640, %v651_v15  }
  0x14   : > { %729 = vperm.xlu1 %2641, %v707_v16  }
  0x16   : > { %2516 = vmatmul.mubr.msk.f32.gmra.mrb[2].mxu0 %vm510_vm0, %v496_v13 }
  0x17   : > { %2518 = vmatprep.mubr.msk.f32.mxu0 %vm510_vm0, %v497_v14  ;;  %678 = vperm.xlu0 %2640, %v652_v19  }
  0x18   : > { %734 = vperm.xlu1 %2641, %v708_v20  }
  0x1a   : > { %2519 = vmatmul.mubr.msk.f32.gmra.mrb[4].mxu0 %vm510_vm0, %v498_v17 }
  0x1b   : > { %2521 = vmatprep.mubr.msk.f32.mxu0 %vm510_vm0, %v499_v18  ;;  %683 = vperm.xlu0 %2640, %v653_v22   ;;  %v1473_v22 = vld [vmem:[%s3152_s13 + $0x10] sm:$0xff] }
  0x1c   : > { %739 = vperm.xlu1 %2641, %v709_v23   ;;  %v1475_v23 = vld [vmem:[%s3152_s13 + $0x20] sm:$0xff] }
  0x1e   : > { %2522 = vmatmul.mubr.msk.f32.gmra.mrb[6].mxu0 %vm510_vm0, %v500_v21 }
  0x1f   : > { %688 = vperm.xlu0 %2640, %v654_v24   ;;  %v1477_v24 = vld [vmem:[%s3152_s13 + $0x30] sm:$0xff] }
  0x20   : > { %744 = vperm.xlu1 %2641, %v710_v25   ;;  %v1479_v25 = vld [vmem:[%s3152_s13 + $0x40] sm:$0xff] }
  0x23   : > { %693 = vperm.xlu0 %2640, %v655_v26   ;;  %v1483_v26 = vld [vmem:[%s3152_s13 + $0x60] sm:$0xff] }
  0x24   : > { %749 = vperm.xlu1 %2641, %v711_v27   ;;  %v1471_v27 = vld [vmem:[%s3152_s13] sm:$0xff] }
  0x86   : > { %v659_v28 = vpop.permute.xlu0 %658  ;;  %v664_v29 = vpop.permute.xlu1 %663 }
  0x8a   : > { %v715_v30 = vpop.permute.xlu0 %714  ;;  %v720_v31 = vpop.permute.xlu1 %719 }
  0x8e   : > { %v669_v32 = vpop.permute.xlu0 %668  ;;  %v725_v33 = vpop.permute.xlu1 %724 }
  0x92   : > { %v674_v34 = vpop.permute.xlu0 %673 }
  0x93   : > { %v730_v35 = vpop.permute.xlu1 %729 }
  0x96   : > { %v679_v36 = vpop.permute.xlu0 %678 }
  0x97   : > { %v735_v38 = vpop.permute.xlu1 %734 }
  0x9a   : > { %v684_v44 = vpop.permute.xlu0 %683 }
  0x9b   : > { %v740_v49 = vpop.permute.xlu1 %739 }
  0x9e   : > { %v689_v59 = vpop.permute.xlu0 %688 }
  0x9f   : > { %v745_v1 = vpop.permute.xlu1 %744 }
  0xa2   : > { %v694_v11 = vpop.permute.xlu0 %693 }
  0xa3   : > { %v750_v14 = vpop.permute.xlu1 %749 }
  0xe5   : > { %v2514_v39 = vpop.f32.mrb[0].mxu0 }
  0xe6   : > { %v607_v40 = vadd.f32 %v2514_v39, %v2400_v37  ;;  %v601_v41 = vpop.f32.mrb[1].mxu0  ;;  %v1486_v39 = vld [vmem:[%s3152_s13 + $0x78] sm:$0xff] }
  0xe7   : > { %v602_v42 = vadd.f32 %v2400_v37, %v601_v41  ;;  %v1585_v41 = vld [vmem:[%s3153_s14 + $0x10] sm:$0xff] }
  0xe8   : > { %v641_v43 = vmax.f32 %v607_v40, 0.0  ;;  %v1591_v40 = vld [vmem:[%s3153_s14 + $0x40] sm:$0xff] }
  0xe9   : > { %v640_v45 = vmax.f32 %v602_v42, 0.0  ;;  %v2517_v46 = vpop.f32.mrb[2].mxu0  ;;  %v1595_v42 = vld [vmem:[%s3153_s14 + $0x60] sm:$0xff] }
  0xea   : > { %v697_v47 = vmul.f32 %v664_v29, %v641_v43  ;;  %v611_v48 = vpop.f32.mrb[3].mxu0  ;;  %v617_v51 = vadd.f32 %v2517_v46, %v2400_v37  ;;  %v1481_v29 = vld [vmem:[%s3152_s13 + $0x50] sm:$0xff]  ;;  %v1588_v46 = vld [vmem:[%s3153_s14 + $0x28] sm:$0xff] }
  0xeb   : > { %v696_v50 = vmul.f32 %v659_v28, %v640_v45  ;;  %v612_v52 = vadd.f32 %v2400_v37, %v611_v48  ;;  %v1472_v28 = vld [vmem:[%s3152_s13 + $0x8] sm:$0xff]  ;;  %v1589_v43 = vld [vmem:[%s3153_s14 + $0x30] sm:$0xff] }
  0xec   : > { %v753_v53 = vadd.f32 %v720_v31, %v697_v47  ;;  %v643_v60 = vmax.f32 %v617_v51, 0.0  ;;  %v1485_v31 = vld [vmem:[%s3152_s13 + $0x70] sm:$0xff]  ;;  %v1592_v48 = vld [vmem:[%s3153_s14 + $0x48] sm:$0xff]  ;;  %v1590_v51 = vld [vmem:[%s3153_s14 + $0x38] sm:$0xff] }
  0xed   : > { %v642_v54 = vmax.f32 %v612_v52, 0.0  ;;  %v2520_v55 = vpop.f32.mrb[4].mxu0  ;;  %v752_v56 = vadd.f32 %v715_v30, %v696_v50  ;;  %v1476_v30 = vld [vmem:[%s3152_s13 + $0x28] sm:$0xff]  ;;  %v1593_v45 = vld [vmem:[%s3153_s14 + $0x50] sm:$0xff]  ;;  %v1594_v52 = vld [vmem:[%s3153_s14 + $0x58] sm:$0xff] }
  0xee   : > { %v627_v57 = vadd.f32 %v2520_v55, %v2400_v37  ;;  %792 = vxpose.xlu1.b32.start.end [1/1] (short) (narrow) %v753_v53, 16  ;;  %v621_v58 = vpop.f32.mrb[5].mxu0  ;;  %v699_v7 = vmul.f32 %v674_v34, %v643_v60  ;;  %v1484_v34 = vld [vmem:[%s3152_s13 + $0x68] sm:$0xff]  ;;  %v1597_v47 = vld [vmem:[%s3153_s14 + $0x70] sm:$0xff]  ;;  %v1598_v53 = vld [vmem:[%s3153_s14 + $0x78] sm:$0xff] }
  0xef   : > { %v698_v61 = vmul.f32 %v669_v32, %v642_v54  ;;  %760 = vxpose.xlu0.b32.start.end [1/1] (short) (narrow) %v752_v56, 16  ;;  %v622_v63 = vadd.f32 %v2400_v37, %v621_v58  ;;  %v1480_v32 = vld [vmem:[%s3152_s13 + $0x48] sm:$0xff]  ;;  %v1234_v54 = vld [vmem:[%s3144_s5] sm:$0xff] }
  0xf0   : > { %v645_v62 = vmax.f32 %v627_v57, 0.0  ;;  %v755_v15 = vadd.f32 %v730_v35, %v699_v7  ;;  %v1478_v35 = vld [vmem:[%s3152_s13 + $0x38] sm:$0xff]  ;;  %v1596_v50 = vld [vmem:[%s3153_s14 + $0x68] sm:$0xff] }
  0xf1   : > { %v2523_v2 = vpop.f32.mrb[6].mxu0  ;;  %v754_v3 = vadd.f32 %v725_v33, %v698_v61  ;;  %v644_v8 = vmax.f32 %v622_v63, 0.0  ;;  %v1474_v33 = vld [vmem:[%s3152_s13 + $0x18] sm:$0xff]  ;;  %v1235_v55 = vld [vmem:[%s3144_s5 + $0x8] sm:$0xff] }
  0xf2   : > { %v701_v4 = vmul.f32 %v684_v44, %v645_v62  ;;  %v637_v5 = vadd.f32 %v2523_v2, %v2400_v37  ;;  %v631_v6 = vpop.f32.mrb[7].mxu0  ;;  %v1584_v44 = vld [vmem:[%s3153_s14 + $0x8] sm:$0xff]  ;;  %v2605_v56 = vpack.c.bf16 %v1235_v55, %v1234_v54 }
  0xf3   : > { %v632_v12 = vadd.f32 %v2400_v37, %v631_v6  ;;  %v700_v16 = vmul.f32 %v679_v36, %v644_v8  ;;  %v1583_v36 = vld [vmem:[%s3153_s14] sm:$0xff]  ;;  %v1482_v37 = vld [vmem:[%s3152_s13 + $0x58] sm:$0xff] }
  0xf4   : > { %v647_v9 = vmax.f32 %v637_v5, 0.0  ;;  %824 = vxpose.xlu0.b32.start.end [1/1] (short) (narrow) %v754_v3, 16  ;;  %v757_v10 = vadd.f32 %v740_v49, %v701_v4  ;;  %v1586_v49 = vld [vmem:[%s3153_s14 + $0x18] sm:$0xff]  ;;  %2606 = vmatprep.subr.bf16.mxu0 %v2605_v56 }
  0xf5   : > { %v646_v18 = vmax.f32 %v632_v12, 0.0  ;;  %v756_v19 = vadd.f32 %v735_v38, %v700_v16  ;;  %v1587_v38 = vld [vmem:[%s3153_s14 + $0x20] sm:$0xff]  ;;  %2608 = vmatpush3.bf16.msra.mxu0 %v2605_v56 }
  0xf6   : > { %v703_v13 = vmul.f32 %v694_v11, %v647_v9  ;;  %920 = vxpose.xlu1.b32.start.end [1/1] (short) (narrow) %v757_v10, 16  ;;  %v1236_v9 = vld [vmem:[%s3144_s5 + $0x10] sm:$0xff]  ;;  %v1237_v10 = vld [vmem:[%s3144_s5 + $0x18] sm:$0xff]  ;;  %v2409_v12 = vld [vmem:[%s3143_s4] ss:$0 sm:$0xff] }
  0xf7   : > { %v702_v20 = vmul.f32 %v689_v59, %v646_v18  ;;  %v2609_v11 = vpack.c.bf16 %v1237_v10, %v1236_v9 }
  0xf8   : > { %v759_v17 = vadd.f32 %v750_v14, %v703_v13 }
  0xf9   : > { %856 = vxpose.xlu0.b32.start.end [1/1] (short) (narrow) %v755_v15, 16  ;;  %v758_v21 = vadd.f32 %v745_v1, %v702_v20  ;;  %2610 = vmatprep.subr.bf16.mxu0 %v2609_v11 }
  0xfa   : > { %2612 = vmatpush3.bf16.msra.mxu0 %v2609_v11 }
  0xfb   : > { %984 = vxpose.xlu1.b32.start.end [1/1] (short) (narrow) %v759_v17, 16 }
  0xfe   : > { %888 = vxpose.xlu0.b32.start.end [1/1] (short) (narrow) %v756_v19, 16 }
 0x103   : > { %952 = vxpose.xlu0.b32.start.end [1/1] (short) (narrow) %v758_v21, 16 }
 0x11d   : > { %1499 = vperm.xlu1 %2641, %v1473_v22  }
 0x121   : > { %1509 = vperm.xlu1 %2641, %v1475_v23  }
 0x125   : > { %1519 = vperm.xlu1 %2641, %v1477_v24  }
 0x129   : > { %1529 = vperm.xlu1 %2641, %v1479_v25  }
 0x12d   : > { %1549 = vperm.xlu1 %2641, %v1483_v26  }
 0x130   : > { %1489 = vperm.xlu0 %2640, %v1471_v27  }
 0x131   : > { %1494 = vperm.xlu1 %2641, %v1472_v28  }
 0x134   : > { %1539 = vperm.xlu0 %2640, %v1481_v29  }
 0x135   : > { %1514 = vperm.xlu1 %2641, %v1476_v30  }
 0x138   : > { %1559 = vperm.xlu0 %2640, %v1485_v31  }
 0x139   : > { %1534 = vperm.xlu1 %2641, %v1480_v32  }
 0x13c   : > { %1504 = vperm.xlu0 %2640, %v1474_v33  }
 0x13d   : > { %1554 = vperm.xlu1 %2641, %v1484_v34  }
 0x140   : > { %1524 = vperm.xlu0 %2640, %v1478_v35  }
 0x141   : > { %1601 = vperm.xlu1 %2641, %v1583_v36  }
 0x144   : > { %1544 = vperm.xlu0 %2640, %v1482_v37  }
 0x145   : > { %1621 = vperm.xlu1 %2641, %v1587_v38  }
 0x148   : > { %1564 = vperm.xlu0 %2640, %v1486_v39  }
 0x149   : > { %1641 = vperm.xlu1 %2641, %v1591_v40  }
 0x14c   : > { %1611 = vperm.xlu0 %2640, %v1585_v41  }
 0x14d   : > { %1661 = vperm.xlu1 %2641, %v1595_v42  }
 0x150   : > { %1631 = vperm.xlu0 %2640, %v1589_v43  }
 0x151   : > { %1606 = vperm.xlu1 %2641, %v1584_v44  }
 0x154   : > { %1651 = vperm.xlu0 %2640, %v1593_v45  }
 0x155   : > { %1626 = vperm.xlu1 %2641, %v1588_v46  }
 0x158   : > { %1671 = vperm.xlu0 %2640, %v1597_v47  }
 0x159   : > { %1646 = vperm.xlu1 %2641, %v1592_v48  }
 0x15c   : > { %1616 = vperm.xlu0 %2640, %v1586_v49  }
 0x15d   : > { %1666 = vperm.xlu1 %2641, %v1596_v50  }
 0x160   : > { %1636 = vperm.xlu0 %2640, %v1590_v51  }
 0x164   : > { %1656 = vperm.xlu0 %2640, %v1594_v52  }
 0x168   : > { %1676 = vperm.xlu0 %2640, %v1598_v53  }
 0x16e   : > { %v2929_v58 = vpop.trf.xlu1 }
 0x16f   : > { %v2927_v57 = vpop.trf.xlu0 }
 0x170   : > { %2526 = vmatprep.mubr.msk.f32.mxu1 %vm1024_vm1, %v2927_v57 }
 0x172   : > { %v2939_v60 = vpop.trf.xlu1 }
 0x173   : > { %v2933_v59 = vpop.trf.xlu0 }
 0x174   : > { %2527 = vmatmul.mubr.msk.f32.vlgmr.msra.gmra.mrb[0].mxu1 %vm1024_vm1, %v2933_v59 }
 0x175   : > { %2529 = vmatprep.mubr.msk.f32.mxu1 %vm1024_vm1, %v2929_v58 }
 0x176   : > { %v2957_v1 = vpop.trf.xlu1 }
 0x177   : > { %v2941_v61 = vpop.trf.xlu0 }
 0x178   : > { %2530 = vmatmul.mubr.msk.f32.gmra.mrb[2].mxu1 %vm1024_vm1, %v2939_v60 }
 0x179   : > { %2532 = vmatprep.mubr.msk.f32.mxu1 %vm1024_vm1, %v2941_v61 }
 0x17a   : > { %v2965_v3 = vpop.trf.xlu1 }
 0x17b   : > { %v2947_v62 = vpop.trf.xlu0 }
 0x17c   : > { %2533 = vmatmul.mubr.msk.f32.gmra.mrb[4].mxu1 %vm1024_vm1, %v2947_v62 }
 0x17e   : > { %v2975_v6 = vpop.trf.xlu1 }
 0x17f   : > { %v2951_v63 = vpop.trf.xlu0 }
 0x180   : > { %2535 = vmatprep.mubr.msk.f32.mxu1 %vm1024_vm1, %v2951_v63 }
 0x182   : > { %v2987_v8 = vpop.trf.xlu1 }
 0x183   : > { %v2955_v0 = vpop.trf.xlu0 }
 0x184   : > { %2536 = vmatmul.mubr.msk.f32.gmra.mrb[6].mxu1 %vm1024_vm1, %v2955_v0 }
 0x187   : > { %v2961_v2 = vpop.trf.xlu0 }
 0x188   : > { %2538 = vmatprep.mubr.msk.f32.mxu1 %vm1024_vm1, %v2961_v2 }
 0x18b   : > { %v2967_v4 = vpop.trf.xlu0 }
 0x18c   : > { %2539 = vmatmul.mubr.msk.f32.gmra.mrb[8].mxu1 %vm1024_vm1, %v2967_v4 }
 0x18d   : > { %2541 = vmatprep.mubr.msk.f32.mxu1 %vm1024_vm1, %v2957_v1 }
 0x18f   : > { %v2973_v5 = vpop.trf.xlu0 }
 0x190   : > { %2542 = vmatmul.mubr.msk.f32.gmra.mrb[10].mxu1 %vm1024_vm1, %v2965_v3 }
 0x191   : > { %2544 = vmatprep.mubr.msk.f32.mxu1 %vm1024_vm1, %v2973_v5 }
 0x193   : > { %v2981_v7 = vpop.trf.xlu0 }
 0x194   : > { %2545 = vmatmul.mubr.msk.f32.gmra.mrb[12].mxu1 %vm1024_vm1, %v2981_v7 }
 0x195   : > { %2547 = vmatprep.mubr.msk.f32.mxu1 %vm1024_vm1, %v2975_v6 }
 0x198   : > { %2548 = vmatmul.mubr.msk.f32.gmra.mrb[14].mxu1 %vm1024_vm1, %v2987_v8 }
 0x247   : > { %v2528_v13 = vpop.f32.mrb[0].mxu1 }
 0x248   : > { %v1145_v14 = vadd.f32 %v2528_v13, %v2409_v12  ;;  %v1139_v15 = vpop.f32.mrb[1].mxu1 }
 0x249   : > { %v1140_v16 = vadd.f32 %v2409_v12, %v1139_v15 }
 0x24a   : > { %v1219_v19 = vmax.f32 %v1145_v14, 0.0  ;;  %v1500_v14 = vpop.permute.xlu1 %1499 }
 0x24b   : > { %v1218_v17 = vmax.f32 %v1140_v16, 0.0  ;;  %v2531_v18 = vpop.f32.mrb[2].mxu1 }
 0x24c   : > { %v1155_v20 = vadd.f32 %v2531_v18, %v2409_v12  ;;  %v1149_v21 = vpop.f32.mrb[3].mxu1 }
 0x24d   : > { %v1150_v22 = vadd.f32 %v2409_v12, %v1149_v21  ;;  %2558 = vmatprep.mubr.msk.f32.mxu0 %vm1238_vm2, %v1218_v17  ;;  %v1490_v17 = vpop.permute.xlu0 %1489 }
 0x24e   : > { %2559 = vmatmul.mubr.msk.f32.vlgmr.msra.gmra.mrb[8].mxu0 %vm1238_vm2, %v1219_v19  ;;  %v1221_v25 = vmax.f32 %v1155_v20, 0.0  ;;  %v1510_v15 = vpop.permute.xlu1 %1509 }
 0x24f   : > { %v1220_v23 = vmax.f32 %v1150_v22, 0.0  ;;  %v2534_v24 = vpop.f32.mrb[4].mxu1 }
 0x250   : > { %v1165_v26 = vadd.f32 %v2534_v24, %v2409_v12  ;;  %v1159_v27 = vpop.f32.mrb[5].mxu1 }
 0x251   : > { %v1160_v28 = vadd.f32 %v2409_v12, %v1159_v27  ;;  %2561 = vmatprep.mubr.msk.f32.mxu0 %vm1238_vm2, %v1220_v23  ;;  %v3020_v19 = vpop.permute.xlu0 %1539 }
 0x252   : > { %2562 = vmatmul.mubr.msk.f32.gmra.mrb[10].mxu0 %vm1238_vm2, %v1221_v25  ;;  %v1223_v30 = vmax.f32 %v1165_v26, 0.0  ;;  %v3016_v16 = vpop.permute.xlu1 %1519 }
 0x253   : > { %v1222_v29 = vmax.f32 %v1160_v28, 0.0 }
 0x255   : > { %2564 = vmatprep.mubr.msk.f32.mxu0 %vm1238_vm2, %v1222_v29  ;;  %v3024_v20 = vpop.permute.xlu0 %1559 }
 0x256   : > { %2565 = vmatmul.mubr.msk.f32.gmra.mrb[12].mxu0 %vm1238_vm2, %v1223_v30  ;;  %v3018_v18 = vpop.permute.xlu1 %1529 }
 0x257   : > { %v2537_v31 = vpop.f32.mrb[6].mxu1 }
 0x258   : > { %v1175_v32 = vadd.f32 %v2537_v31, %v2409_v12  ;;  %v1169_v33 = vpop.f32.mrb[7].mxu1 }
 0x259   : > { %v1170_v34 = vadd.f32 %v2409_v12, %v1169_v33  ;;  %v1505_v22 = vpop.permute.xlu0 %1504 }
 0x25a   : > { %v1225_v36 = vmax.f32 %v1175_v32, 0.0 }
 0x25b   : > { %v1224_v35 = vmax.f32 %v1170_v34, 0.0 }
 0x25d   : > { %2567 = vmatprep.mubr.msk.f32.mxu0 %vm1238_vm2, %v1224_v35  ;;  %v3026_v24 = vpop.permute.xlu0 %1524  ;;  %v3041_v35 = vld [vmem:[%s3145_s6] ss:$0 sm:$0xff] }
 0x25e   : > { %2568 = vmatmul.mubr.msk.f32.gmra.mrb[14].mxu0 %vm1238_vm2, %v1225_v36 }
 0x25f   : > { %v2540_v37 = vpop.f32.mrb[8].mxu1 }
 0x260   : > { %v1185_v38 = vadd.f32 %v2540_v37, %v2409_v12  ;;  %v1179_v39 = vpop.f32.mrb[9].mxu1 }
 0x261   : > { %v1180_v40 = vadd.f32 %v2409_v12, %v1179_v39  ;;  %v3030_v26 = vpop.permute.xlu0 %1544 }
 0x262   : > { %v1227_v43 = vmax.f32 %v1185_v38, 0.0 }
 0x263   : > { %v1226_v41 = vmax.f32 %v1180_v40, 0.0  ;;  %v2543_v42 = vpop.f32.mrb[10].mxu1 }
 0x264   : > { %v1195_v44 = vadd.f32 %v2543_v42, %v2409_v12  ;;  %v1189_v45 = vpop.f32.mrb[11].mxu1 }
 0x265   : > { %v1190_v46 = vadd.f32 %v2409_v12, %v1189_v45  ;;  %2570 = vmatprep.mubr.msk.f32.mxu0 %vm1238_vm2, %v1226_v41  ;;  %v3034_v28 = vpop.permute.xlu0 %1564 }
 0x266   : > { %2571 = vmatmul.mubr.msk.f32.gmra.mrb[16].mxu0 %vm1238_vm2, %v1227_v43  ;;  %v1229_v49 = vmax.f32 %v1195_v44, 0.0 }
 0x267   : > { %v1228_v47 = vmax.f32 %v1190_v46, 0.0  ;;  %v2546_v48 = vpop.f32.mrb[12].mxu1 }
 0x268   : > { %v1205_v50 = vadd.f32 %v2546_v48, %v2409_v12  ;;  %v1199_v51 = vpop.f32.mrb[13].mxu1 }
 0x269   : > { %v1200_v52 = vadd.f32 %v2409_v12, %v1199_v51  ;;  %2573 = vmatprep.mubr.msk.f32.mxu0 %vm1238_vm2, %v1228_v47  ;;  %v1612_v30 = vpop.permute.xlu0 %1611 }
 0x26a   : > { %2574 = vmatmul.mubr.msk.f32.gmra.mrb[18].mxu0 %vm1238_vm2, %v1229_v49  ;;  %v1231_v55 = vmax.f32 %v1205_v50, 0.0 }
 0x26b   : > { %v1230_v53 = vmax.f32 %v1200_v52, 0.0  ;;  %v2549_v54 = vpop.f32.mrb[14].mxu1 }
 0x26c   : > { %v1215_v56 = vadd.f32 %v2549_v54, %v2409_v12  ;;  %v1209_v9 = vpop.f32.mrb[15].mxu1 }
 0x26d   : > { %v1210_v10 = vadd.f32 %v2409_v12, %v1209_v9  ;;  %2576 = vmatprep.mubr.msk.f32.mxu0 %vm1238_vm2, %v1230_v53  ;;  %v3022_v12 = vpop.permute.xlu1 %1549  ;;  %v1632_v32 = vpop.permute.xlu0 %1631 }
 0x26e   : > { %2577 = vmatmul.mubr.msk.f32.gmra.mrb[20].mxu0 %vm1238_vm2, %v1231_v55  ;;  %v1233_v13 = vmax.f32 %v1215_v56, 0.0 }
 0x26f   : > { %v1232_v11 = vmax.f32 %v1210_v10, 0.0 }
 0x271   : > { %2579 = vmatprep.mubr.msk.f32.mxu0 %vm1238_vm2, %v1232_v11  ;;  %v1495_v21 = vpop.permute.xlu1 %1494  ;;  %v3045_v39 = vpop.permute.xlu0 %1651 }
 0x272   : > { %2580 = vmatmul.mubr.msk.f32.gmra.mrb[22].mxu0 %vm1238_vm2, %v1233_v13 }
 0x275   : > { %v1515_v23 = vpop.permute.xlu1 %1514  ;;  %v3055_v51 = vpop.permute.xlu0 %1671 }
 0x279   : > { %v3028_v25 = vpop.permute.xlu1 %1534  ;;  %v1617_v11 = vpop.permute.xlu0 %1616 }
 0x27d   : > { %v3032_v27 = vpop.permute.xlu1 %1554 }
 0x281   : > { %v1602_v29 = vpop.permute.xlu1 %1601 }
 0x285   : > { %v1622_v31 = vpop.permute.xlu1 %1621 }
 0x289   : > { %v3036_v33 = vpop.permute.xlu1 %1641 }
 0x28d   : > { %v3048_v41 = vpop.permute.xlu1 %1661 }
 0x291   : > { %v1607_v53 = vpop.permute.xlu1 %1606 }
 0x321   : > { %v2560_v34 = vpop.f32.mrb[8].mxu0 }
 0x322   : > { %v1433_v36 = vadd.f32 %v2560_v34, %v2933_v59  ;;  %v1353_v37 = vpop.f32.mrb[9].mxu0 }
 0x323   : > { %v1432_v38 = vadd.f32 %v1353_v37, %v2927_v57 }
 0x324   : > { %v1456_v40 = vadd.f32 %v3041_v35, %v1433_v36  ;;  %v1627_v36 = vpop.permute.xlu1 %1626 }
 0x325   : > { %v1455_v42 = vadd.f32 %v3041_v35, %v1432_v38  ;;  %v2563_v43 = vpop.f32.mrb[10].mxu0 }
 0x326   : > { %v1435_v44 = vadd.f32 %v2563_v43, %v2939_v60  ;;  %v1363_v45 = vpop.f32.mrb[11].mxu0  ;;  %v1568_v48 = vmul.f32 %v1495_v21, %v1456_v40 }
 0x327   : > { %v1567_v46 = vmul.f32 %v1490_v17, %v1455_v42  ;;  %v1434_v47 = vadd.f32 %v1363_v45, %v2929_v58 }
 0x328   : > { %v1458_v49 = vadd.f32 %v3041_v35, %v1435_v44  ;;  %v1680_v60 = vadd.f32 %v1607_v53, %v1568_v48 }
 0x329   : > { %v1679_v59 = vadd.f32 %v1602_v29, %v1567_v46  ;;  %v1457_v57 = vadd.f32 %v3041_v35, %v1434_v47  ;;  %v2566_v50 = vpop.f32.mrb[12].mxu0 }
 0x32a   : > { %v1373_v52 = vpop.f32.mrb[13].mxu0  ;;  %v1570_v56 = vmul.f32 %v1505_v22, %v1458_v49  ;;  %v1437_v58 = vadd.f32 %v2566_v50, %v2947_v62 }
 0x32b   : > { %v1569_v54 = vmul.f32 %v1500_v14, %v1457_v57  ;;  %v1436_v55 = vadd.f32 %v1373_v52, %v2941_v61  ;;  %1695 = vxpose.xlu1.b32.start [1/2] (short) (narrow) %v1679_v59, 8 }
 0x32c   : > { %v1682_v13 = vadd.f32 %v1617_v11, %v1570_v56  ;;  %v1460_v17 = vadd.f32 %v3041_v35, %v1437_v58 }
 0x32d   : > { %v1681_v9 = vadd.f32 %v1612_v30, %v1569_v54  ;;  %v1459_v10 = vadd.f32 %v3041_v35, %v1436_v55 }
 0x32e   : > { %v1572_v61 = vmul.f32 %v1515_v23, %v1460_v17 }
 0x32f   : > { %1696 = vxpose.xlu1.b32.end [2/2] (short) (narrow) %v1680_v60, 8  ;;  %1727 = vxpose.xlu0.b32.start [1/2] (short) (narrow) %v1681_v9, 8  ;;  %v1571_v21 = vmul.f32 %v1510_v15, %v1459_v10 }
 0x330   : > { %v1684_v37 = vadd.f32 %v1627_v36, %v1572_v61 }
 0x331   : > { %v2569_v29 = vpop.f32.mrb[14].mxu0  ;;  %v1683_v62 = vadd.f32 %v1622_v31, %v1571_v21 }
 0x332   : > { %v1383_v34 = vpop.f32.mrb[15].mxu0  ;;  %v1439_v22 = vadd.f32 %v2569_v29, %v2955_v0 }
 0x333   : > { %v1438_v14 = vadd.f32 %v1383_v34, %v2951_v63  ;;  %1728 = vxpose.xlu0.b32.end [2/2] (short) (narrow) %v1682_v13, 8 }
 0x334   : > { %v1462_v38 = vadd.f32 %v3041_v35, %v1439_v22 }
 0x335   : > { %v1461_v30 = vadd.f32 %v3041_v35, %v1438_v14 }
 0x336   : > { %v1574_v23 = vmul.f32 %v3026_v24, %v1462_v38 }
 0x337   : > { %1759 = vxpose.xlu0.b32.start [1/2] (short) (narrow) %v1683_v62, 8  ;;  %v1573_v40 = vmul.f32 %v3016_v16, %v1461_v30 }
 0x339   : > { %v2572_v42 = vpop.f32.mrb[16].mxu0  ;;  %v1685_v45 = vadd.f32 %v1632_v32, %v1573_v40 }
 0x33a   : > { %v1441_v15 = vadd.f32 %v2572_v42, %v2967_v4  ;;  %v1393_v43 = vpop.f32.mrb[17].mxu0  ;;  %v1637_v4 = vpop.permute.xlu0 %1636 }
 0x33b   : > { %v1440_v63 = vadd.f32 %v1393_v43, %v2961_v2  ;;  %1760 = vxpose.xlu0.b32.end [2/2] (short) (narrow) %v1684_v37, 8  ;;  %v1686_v59 = vadd.f32 %v1637_v4, %v1574_v23 }
 0x33c   : > { %v1464_v0 = vadd.f32 %v3041_v35, %v1441_v15 }
 0x33d   : > { %v1463_v31 = vadd.f32 %v3041_v35, %v1440_v63  ;;  %v2575_v44 = vpop.f32.mrb[18].mxu0 }
 0x33e   : > { %v1443_v46 = vadd.f32 %v2575_v44, %v2965_v3  ;;  %v1403_v47 = vpop.f32.mrb[19].mxu0  ;;  %v1576_v24 = vmul.f32 %v3028_v25, %v1464_v0  ;;  %v1657_v9 = vpop.permute.xlu0 %1656 }
 0x33f   : > { %v1575_v16 = vmul.f32 %v3018_v18, %v1463_v31  ;;  %v1442_v48 = vadd.f32 %v1403_v47, %v2957_v1  ;;  %1791 = vxpose.xlu0.b32.start [1/2] (short) (narrow) %v1685_v45, 8  ;;  %v1647_v1 = vpop.permute.xlu1 %1646 }
 0x340   : > { %v1466_v2 = vadd.f32 %v3041_v35, %v1443_v46  ;;  %v1688_v54 = vadd.f32 %v1647_v1, %v1576_v24 }
 0x341   : > { %v1465_v49 = vadd.f32 %v3041_v35, %v1442_v48  ;;  %v2578_v57 = vpop.f32.mrb[20].mxu0  ;;  %v1687_v50 = vadd.f32 %v3036_v33, %v1575_v16 }
 0x342   : > { %v1445_v32 = vadd.f32 %v2578_v57, %v2981_v7  ;;  %v1413_v3 = vpop.f32.mrb[21].mxu0  ;;  %v1578_v53 = vmul.f32 %v3030_v26, %v1466_v2  ;;  %v1677_v21 = vpop.permute.xlu0 %1676 }
 0x343   : > { %v1577_v52 = vmul.f32 %v3020_v19, %v1465_v49  ;;  %v1444_v18 = vadd.f32 %v1413_v3, %v2973_v5  ;;  %1823 = vxpose.xlu1.b32.start [1/2] (short) (narrow) %v1687_v50, 8  ;;  %1792 = vxpose.xlu0.b32.end [2/2] (short) (narrow) %v1686_v59, 8 }
 0x344   : > { %v1468_v25 = vadd.f32 %v3041_v35, %v1445_v32  ;;  %v1690_v58 = vadd.f32 %v1657_v9, %v1578_v53 }
 0x345   : > { %v1467_v55 = vadd.f32 %v3041_v35, %v1444_v18  ;;  %v2581_v60 = vpop.f32.mrb[22].mxu0  ;;  %v1689_v33 = vadd.f32 %v3045_v39, %v1577_v52 }
 0x346   : > { %v1447_v7 = vadd.f32 %v2581_v60, %v2987_v8  ;;  %v1423_v56 = vpop.f32.mrb[23].mxu0  ;;  %v1580_v26 = vmul.f32 %v3032_v27, %v1468_v25  ;;  %v1667_v8 = vpop.permute.xlu1 %1666 }
 0x347   : > { %v1579_v19 = vmul.f32 %v3022_v12, %v1467_v55  ;;  %v1446_v5 = vadd.f32 %v1423_v56, %v2975_v6  ;;  %1824 = vxpose.xlu1.b32.end [2/2] (short) (narrow) %v1688_v54, 8  ;;  %1855 = vxpose.xlu0.b32.start [1/2] (short) (narrow) %v1689_v33, 8 }
 0x348   : > { %v1470_v10 = vadd.f32 %v3041_v35, %v1447_v7  ;;  %v1692_v17 = vadd.f32 %v1667_v8, %v1580_v26  ;;  %v2131_v7 = vld [vmem:[%s3147_s8] sm:$0xff] }
 0x349   : > { %v1469_v11 = vadd.f32 %v3041_v35, %v1446_v5  ;;  %v1691_v13 = vadd.f32 %v3048_v41, %v1579_v19  ;;  %v2651_v35 = vmov 1983009808   ;;  %v1956_v41 = vlaneseq  ;;  %v2133_v5 = vld [vmem:[%s3147_s8 + $0x10] sm:$0xff] }
 0x34a   : > { %v1582_v12 = vmul.f32 %v3034_v28, %v1470_v10  ;;  %v1954_v14 = vunpack.c.l.s4 %v2651_v35 }
 0x34b   : > { %v1581_v39 = vmul.f32 %v3024_v20, %v1469_v11  ;;  %1887 = vxpose.xlu1.b32.start [1/2] (short) (narrow) %v1691_v13, 8  ;;  %1856 = vxpose.xlu0.b32.end [2/2] (short) (narrow) %v1690_v58, 8  ;;  %v1957_v22 = vshrl.u32 %v1956_v41, 7  ;;  %v2331_v11 = vld [vmem:[%s3149_s10] sm:$0xff] }
 0x34c   : > { %v1694_v27 = vadd.f32 %v1677_v21, %v1582_v12  ;;  %v1955_v20 = vunpack.c.0.s8 %v1954_v14  ;;  %v2127_v13 = vld [vmem:[%s3146_s7] sm:$0xff]  ;;  %v2132_v21 = vld [vmem:[%s3147_s8 + $0x8] sm:$0xff] }
 0x34d   : > { %v1693_v6 = vadd.f32 %v3055_v51, %v1581_v39  ;;  %v2652_v51 = vmov 1934713408   ;;  %2584 = vmatprep.mubr.msk.f32.mxu1 %vm1024_vm1, %v2127_v13 }
 0x34e   : > { %v1958_v36 = vsub.s32 %v1955_v20, %v1957_v22  ;;  %v2018_v40 = vunpack.c.l.s4 %v2652_v51  ;;  %v2128_v51 = vld [vmem:[%s3146_s7 + $0x8] sm:$0xff] }
 0x34f   : > { %1888 = vxpose.xlu1.b32.end [2/2] (short) (narrow) %v1692_v17, 8  ;;  %1919 = vxpose.xlu0.b32.start [1/2] (short) (narrow) %v1693_v6, 8 }
 0x350   : > { %v2019_v63 = vunpack.c.0.s8 %v2018_v40  ;;  %v2129_v40 = vld [vmem:[%s3146_s7 + $0x10] sm:$0xff] }
 0x352   : > { %v2022_v16 = vsub.s32 %v2019_v63, %v1957_v22 }
 0x353   : > { %1920 = vxpose.xlu0.b32.end [2/2] (short) (narrow) %v1694_v27, 8  ;;  %v2134_v27 = vld [vmem:[%s3147_s8 + $0x18] sm:$0xff] }
 0x3ab   : > { %v1711_v61 = vpop.trf.xlu1 }
 0x3af   : > { %v1743_v29 = vpop.trf.xlu0 }
 0x3b7   : > { %v1775_v34 = vpop.trf.xlu0 }
 0x3b8   : > { %v1951_v37 = vcombine.low %v1711_v61, %v1775_v34  ;;  %v1952_v45 = vcombine.high %v1711_v61, %v1775_v34 }
 0x3ba   : > { %v1959_v15 = vrot.slane %v1951_v37, %v1958_v36  ;;  %v1966_v50 = vrot.slane %v1952_v45, %v1958_v36 }
 0x3bf   : > { %v1807_v30 = vpop.trf.xlu0 }
 0x3c0   : > { %v1967_v28 = vcombine.low %v1743_v29, %v1807_v30  ;;  %v1968_v46 = vcombine.high %v1743_v29, %v1807_v30 }
 0x3c2   : > { %v1975_v43 = vrot.slane %v1967_v28, %v1958_v36  ;;  %v1982_v32 = vrot.slane %v1968_v46, %v1958_v36 }
 0x3c3   : > { %v1839_v62 = vpop.trf.xlu1 }
 0x3c4   : > { %v2016_v47 = vcombine.high %v1959_v15, %v1975_v43  ;;  %v2015_v48 = vcombine.low %v1959_v15, %v1975_v43  ;;  %v2031_v33 = vcombine.low %v1966_v50, %v1982_v32  ;;  %v2032_v10 = vcombine.high %v1966_v50, %v1982_v32 }
 0x3c5   : > { %v2660_v15 = vmov 0.0|0.0   ;;  %v2662_v43 = vmov 0.0  }
 0x3c6   : > { %v2030_v3 = vrot.slane %v2016_v47, %v2022_v16  ;;  %v2023_v1 = vrot.slane %v2015_v48, %v2022_v16  ;;  %v2039_v19 = vrot.slane %v2031_v33, %v2022_v16  ;;  %v2046_v17 = vrot.slane %v2032_v10, %v2022_v16 }
 0x3c7   : > { %v1871_v38 = vpop.trf.xlu0 }
 0x3cb   : > { %v1903_v42 = vpop.trf.xlu1 }
 0x3cc   : > { %v1983_v23 = vcombine.low %v1839_v62, %v1903_v42  ;;  %v1984_v4 = vcombine.high %v1839_v62, %v1903_v42  ;;  %v2130_v42 = vld [vmem:[%s3146_s7 + $0x18] sm:$0xff] }
 0x3ce   : > { %v1991_v2 = vrot.slane %v1983_v23, %v1958_v36  ;;  %v1998_v52 = vrot.slane %v1984_v4, %v1958_v36 }
 0x3cf   : > { %v1935_v0 = vpop.trf.xlu0 }
 0x3d0   : > { %v1999_v31 = vcombine.low %v1871_v38, %v1935_v0  ;;  %v2000_v44 = vcombine.high %v1871_v38, %v1935_v0 }
 0x3d2   : > { %v2007_v59 = vrot.slane %v1999_v31, %v1958_v36  ;;  %v2014_v24 = vrot.slane %v2000_v44, %v1958_v36 }
 0x3d4   : > { %v2047_v49 = vcombine.low %v1991_v2, %v2007_v59  ;;  %v2048_v57 = vcombine.high %v1991_v2, %v2007_v59  ;;  %v2063_v54 = vcombine.low %v1998_v52, %v2014_v24  ;;  %v2064_v58 = vcombine.high %v1998_v52, %v2014_v24 }
 0x3d6   : > { %v2062_v18 = vrot.slane %v2048_v57, %v2022_v16  ;;  %v2055_v53 = vrot.slane %v2047_v49, %v2022_v16  ;;  %v2071_v9 = vrot.slane %v2063_v54, %v2022_v16  ;;  %v2078_v8 = vrot.slane %v2064_v58, %v2022_v16 }
 0x3d8   : > { %v2081_v25 = vcombine.low %v2030_v3, %v2062_v18  ;;  %v2080_v55 = vcombine.high %v2023_v1, %v2055_v53  ;;  %v2079_v60 = vcombine.low %v2023_v1, %v2055_v53  ;;  %v2082_v56 = vcombine.high %v2030_v3, %v2062_v18  ;;  %v2256_v3 = vld [vmem:[%s3148_s9] sm:$0xff] }
 0x3d9   : > { %v2083_v26 = vcombine.low %v2039_v19, %v2071_v9  ;;  %v2084_v39 = vcombine.high %v2039_v19, %v2071_v9  ;;  %v2085_v12 = vcombine.low %v2046_v17, %v2078_v8  ;;  %v2086_v6 = vcombine.high %v2046_v17, %v2078_v8 }
 0x3da   : > { %2092 = vrot.lane.b32.xlu0 %v2081_v25, %s2653_s24  ;;  %2088 = vrot.lane.b32.xlu1 %v2080_v55, %s2654_s25  ;;  %s2658_s24 = smov 96   ;;  %s2659_s25 = smov 112  }
 0x3de   : > { %2137 = vperm.xlu0 %2640, %v2131_v7   ;;  %2096 = vrot.lane.b32.xlu1 %v2082_v56, %s2655_s28 }
 0x3e2   : > { %2147 = vperm.xlu0 %2640, %v2133_v5   ;;  %2100 = vrot.lane.b32.xlu1 %v2083_v26, %s2656_s30 }
 0x3e6   : > { %2334 = vperm.xlu0 %2640, %v2331_v11   ;;  %2104 = vrot.lane.b32.xlu1 %v2084_v39, %s2657_s23 }
 0x3ea   : > { %2108 = vrot.lane.b32.xlu1 %v2085_v12, %s2658_s24 }
 0x3ee   : > { %2112 = vrot.lane.b32.xlu1 %v2086_v6, %s2659_s25  ;;  %s2399_s25 = sshll.u32 %s3156_s19, 3 }
 0x3ef   : > { %s492_s28 = scalar_lea.vmem %s3154_s15, %s2399_s25 }
 0x3f2   : > { %2142 = vperm.xlu1 %2641, %v2132_v21  }
 0x3f6   : > { %2152 = vperm.xlu1 %2641, %v2134_v27  }
 0x44c   : > { %v2089_v29 = vpop.permute.xlu1 %2088  ;;  %v2093_v41 = vpop.permute.xlu0 %2092 }
 0x44d   : > { %v2115_v61 = vsel %vm510_vm0, %v2079_v60, %v2089_v29 }
 0x44e   : > { %v2116_v20 = vsel %vm1238_vm2, %v2115_v61, %v2093_v41 }
 0x450   : > { %v2097_v34 = vpop.permute.xlu1 %2096 }
 0x451   : > { %v2118_v30 = vsel %vm2117_vm3, %v2116_v20, %v2097_v34 }
 0x454   : > { %v2101_v35 = vpop.permute.xlu1 %2100 }
 0x455   : > { %v2120_v62 = vsel %vm2119_vm4, %v2118_v30, %v2101_v35 }
 0x458   : > { %v2105_v14 = vpop.permute.xlu1 %2104 }
 0x459   : > { %v2122_v36 = vsel %vm2121_vm5, %v2120_v62, %v2105_v14 }
 0x45c   : > { %v2109_v22 = vpop.permute.xlu1 %2108 }
 0x45d   : > { %v2124_v37 = vsel %vm2123_vm6, %v2122_v36, %v2109_v22  ;;  %v2138_v23 = vpop.permute.xlu0 %2137 }
 0x460   : > { %v2113_v28 = vpop.permute.xlu1 %2112 }
 0x461   : > { %v2126_v38 = vsel %vm2125_vm7, %v2124_v37, %v2113_v28  ;;  %v2148_v4 = vpop.permute.xlu0 %2147 }
 0x462   : > { %2582 = vmatprep.subr.mxu1 %v2126_v38 }
 0x463   : > { %2583 = vmatpush3.msra.mxu1 %v2126_v38 }
 0x464   : > { %2585 = vmatmul.mubr.msk.f32.vlgmr.msra.gmra.mrb[16].mxu1 %vm1024_vm1, %v2128_v51  ;;  %2613 = vmatprep.subr.bf16.mxu1 %v2660_v15 }
 0x465   : > { %2587 = vmatprep.mubr.msk.f32.mxu1 %vm1024_vm1, %v2129_v40  ;;  %v2335_v53 = vpop.permute.xlu0 %2334 }
 0x468   : > { %2588 = vmatmul.mubr.msk.f32.gmra.mrb[18].mxu1 %vm1024_vm1, %v2130_v42 }
 0x469   : > { %2598 = vmatprep.mubr.msk.f32.mxu1 %vm2661_vm8, %v2662_v43 }
 0x471   : > { %v2143_v63 = vpop.permute.xlu1 %2142 }
 0x475   : > { %v2153_v47 = vpop.permute.xlu1 %2152 }
 0x537   : > { %v2586_v0 = vpop.f32.mrb[16].mxu1 }
 0x538   : > { %v2239_v31 = vadd.f32 %v2586_v0, %v2143_v63  ;;  %v2233_v44 = vpop.f32.mrb[17].mxu1 }
 0x539   : > { %v2234_v45 = vadd.f32 %v2233_v44, %v2138_v23 }
 0x53a   : > { %v2253_v46 = vmax.f32 %v2239_v31, 0.0 }
 0x53b   : > { %v2252_v16 = vmax.f32 %v2234_v45, 0.0  ;;  %v2589_v48 = vpop.f32.mrb[18].mxu1 }
 0x53c   : > { %v2249_v2 = vadd.f32 %v2589_v48, %v2153_v47  ;;  %v2243_v59 = vpop.f32.mrb[19].mxu1 }
 0x53d   : > { %v2614_v24 = vpack.c.bf16 %v2253_v46, %v2252_v16  ;;  %v2244_v49 = vadd.f32 %v2243_v59, %v2148_v4 }
 0x53e   : > { %v2255_v57 = vmax.f32 %v2249_v2, 0.0 }
 0x53f   : > { %v2254_v50 = vmax.f32 %v2244_v49, 0.0  ;;  %2615 = vmatpush3.bf16.msra.mxu1 %v2614_v24 }
 0x540   : > { %2616 = vmatprep.subr.bf16.mxu1 %v2660_v15 }
 0x541   : > { %v2617_v32 = vpack.c.bf16 %v2255_v57, %v2254_v50 }
 0x543   : > { %2618 = vmatpush3.bf16.msra.mxu1 %v2617_v32 }
 0x546   : > { %2599 = vmatmul.mubr.msk.f32.vlgmr.msra.gmra.mrb[20].mxu1 %vm1238_vm2, %v2256_v3 }
 0x619   : > { %v2326_v52 = vpop.f32.mrb[20].mxu1 }
 0x61a   : > { %v2330_v18 = vadd.f32 %v2326_v52, %v2126_v38  ;;  %v2600_v1 = vpop.f32.mrb[21].mxu1 }
 0x61c   : > { %v2337_v54 = vadd.f32 %v2335_v53, %v2330_v18 }
 0x61e   : > { %2338 = vst [vmem:[%s492_s28] sm:$0xff] %v2337_v54 }
 0x61f PF: > { %s25_s18 = sadd.s32 1, %s2648_s18  }
 0x620   : > { %p22_p4 = scmp.ge.s32.totalorder %s25_s18, 4  }
 0x622   :  { %24 = sbr.rel (!%p22_p4) target bundleno = 1 (0x1), region = 110 }

</bundles_post_ra>
